<compile_context>
chip_gen: v7x
topology: tpu7x:2x2x1
jax: 0.10.0
libtpu: 0.0.40
codegen_flags: <defaults>
</compile_context>

<pallas_src>
import math
import jax
import jax.numpy as jnp
from jax import lax
from jax.experimental import pallas as pl
from jax.experimental.pallas import tpu as pltpu


def _round_up(v, m):
    return ((v + m - 1) // m) * m


def _make_kernel(use_additive, use_attention, use_bias, num_masks, n_prefetch,
                 x_resident, tk):
    """Build a MaskedLinear forward kernel specialized on the static config flags."""
    A = num_masks

    def kernel(*refs):
        # ---- unpack (prefetch..., inputs..., output, scratch) ------------
        p = 0
        idx_ref = refs[p]; p += 1
        alpha_ref = None
        if use_additive and use_attention:
            alpha_ref = refs[p]; p += 1
        bam_sc_ref = None
        if use_bias and use_additive:
            bam_sc_ref = refs[p]; p += 1
        assert p == n_prefetch

        x_ref = refs[p]; p += 1          # (B, K_pad) if resident else (B, tk)
        w_ref = refs[p]; p += 1          # (tn, tk)   store dtype (bf16)
        wm_ref = refs[p]; p += 1         # (tn, tk)   weight_masks[idx] tile
        wadd_ref = None
        if use_additive:
            wadd_ref = refs[p]; p += 1   # (A, tn, tk) if attention else (tn, tk)
        b_ref = bm_ref = bam_ref = None
        if use_bias:
            b_ref = refs[p]; p += 1      # (1, tn)  f32
            bm_ref = refs[p]; p += 1     # (1, tn)  f32, bias_masks[idx] tile
            if use_additive and use_attention:
                bam_ref = refs[p]; p += 1  # (A, tn) f32
        o_ref = refs[p]; p += 1          # (B, tn)
        acc_ref = refs[p]                # (B, tn) f32 scratch

        k = pl.program_id(1)
        nk = pl.num_programs(1)

        @pl.when(k == 0)
        def _():
            acc_ref[...] = jnp.zeros_like(acc_ref)

        # ---- effective weight tile (tn, tk): f32 math on bf16 storage ------
        ow = (w_ref[...].astype(jnp.float32)
              * jax.nn.sigmoid(wm_ref[...].astype(jnp.float32)))
        if use_additive:
            if use_attention:
                # weight_additive_masks[idx] + einsum('a,abc->bc', alpha[idx], wam)
                # folded into one reduction: coeff_a = alpha[a] + (a == idx).
                idx = idx_ref[0]
                for a in range(A):
                    coeff = alpha_ref[a] + jnp.where(
                        idx == a, jnp.float32(1.0), jnp.float32(0.0))
                    ow = ow + coeff * wadd_ref[a].astype(jnp.float32)
            else:
                ow = ow + wadd_ref[...].astype(jnp.float32)

        # ---- x (B, tk) contracted with ow (tn, tk) over K -> (B, tn) -------
        if x_resident:
            x_tile = x_ref[:, pl.ds(pl.multiple_of(k * tk, 128), tk)]
        else:
            x_tile = x_ref[...]
        acc_ref[...] += lax.dot_general(
            x_tile, ow,
            dimension_numbers=(((1,), (1,)), ((), ())),
            preferred_element_type=jnp.float32)

        # ---- epilogue: effective bias + writeback only on last K step ------
        @pl.when(k == nk - 1)
        def _():
            y = acc_ref[...]
            if use_bias:
                ob = b_ref[...] * jax.nn.sigmoid(bm_ref[...])        # (1, tn)
                if use_additive:
                    # NOTE: reference does bias_additive_masks[idx][idx] -> a SCALAR
                    ob = ob + bam_sc_ref[0]
                    if use_attention:
                        for a in range(A):
                            ob = ob + alpha_ref[a] * bam_ref[pl.ds(a, 1), :]
                y = y + ob
            o_ref[...] = y.astype(o_ref.dtype)

    return kernel


def masked_linear_forward(idx, x, params, *, use_additive=False, use_attention=False,
                          weight_store_dtype=jnp.bfloat16,
                          tn_max=512, tk_max=1024):
    """Pallas implementation of MaskedLinear.forward(idx, x)."""
    weight = params["weight"]               # (N, K)
    weight_masks = params["weight_masks"]   # (A, N, K)
    N, K = weight.shape
    A = weight_masks.shape[0]
    B = x.shape[0]
    use_bias = "bias" in params
    out_dtype = x.dtype
    w_item = jnp.dtype(weight_store_dtype).itemsize

    # ---- generation-aware VMEM budget ---------------------------------------
    try:
        vmem_cap = int(pltpu.get_tpu_info().vmem_capacity_bytes)
    except Exception:
        vmem_cap = 64 * 2 ** 20                      # conservative (v7x-like)
    budget = vmem_cap // 2                           # leave headroom for the compiler

    # ---- tile sizes (lane-dense, (8,128)-friendly) ---------------------------
    N_pad128 = _round_up(N, 128)
    K_pad128 = _round_up(K, 128)
    tn = min(tn_max, N_pad128)
    # keep >= 2 N blocks when possible so both v7x TensorCores get work
    if N_pad128 >= 256 and _round_up(N_pad128, tn) // tn < 2:
        tn = _round_up(N_pad128 // 2, 128)
    tk = min(tk_max, K_pad128)

    w_streams = 2 + (A if (use_additive and use_attention)
                     else (1 if use_additive else 0))

    def step_bytes(tk_):
        wb = 2 * w_streams * tn * tk_ * w_item                    # double-buffered weight tiles
        xb = 2 * B * _round_up(K, tk_) * jnp.dtype(x.dtype).itemsize
        ob = 2 * B * tn * (jnp.dtype(out_dtype).itemsize + 4)     # out block + f32 acc
        bb = 2 * (A + 3) * tn * 4                                 # bias-like streams
        return wb + xb + ob + bb

    while step_bytes(tk) > budget and tk > 256:
        tk = max(256, _round_up(tk // 2, 128))

    N_pad = _round_up(N, tn)
    K_pad = _round_up(K, tk)
    grid = (N_pad // tn, K_pad // tk)

    x_resident = (B * K_pad * jnp.dtype(x.dtype).itemsize) <= 4 * 2 ** 20

    # ---- padding helpers -----------------------------------------------------
    def pad_nk(a, dtype):   # (..., N, K) -> (..., N_pad, K_pad), cast to store dtype
        a = a.astype(dtype)
        if a.shape[-2] != N_pad or a.shape[-1] != K_pad:
            pads = [(0, 0)] * (a.ndim - 2) + [(0, N_pad - a.shape[-2]),
                                              (0, K_pad - a.shape[-1])]
            a = jnp.pad(a, pads)
        return a

    def pad_n(a):           # (..., N) -> (..., N_pad)
        if a.shape[-1] != N_pad:
            pads = [(0, 0)] * (a.ndim - 1) + [(0, N_pad - a.shape[-1])]
            a = jnp.pad(a, pads)
        return a

    x_p = x if K == K_pad else jnp.pad(x, ((0, 0), (0, K_pad - K)))

    # ---- scalar-prefetch operands (SMEM; 32-bit) ----------------------------
    prefetch = [jnp.asarray(idx, jnp.int32).reshape(1)]
    if use_additive and use_attention:
        prefetch.append(params["alpha"][idx].reshape(A).astype(jnp.float32))
    if use_bias and use_additive:
        prefetch.append(
            params["bias_additive_masks"][idx, idx].reshape(1).astype(jnp.float32))
    n_pf = len(prefetch)

    # ---- tensor operands + BlockSpecs (built conditionally) -----------------
    operands = [x_p,
                pad_nk(weight, weight_store_dtype),
                pad_nk(weight_masks, weight_store_dtype)]
    if x_resident:
        x_spec = pl.BlockSpec((B, K_pad), lambda n, k, *pf: (0, 0))   # resident
    else:
        x_spec = pl.BlockSpec((B, tk), lambda n, k, *pf: (0, k))
    in_specs = [
        x_spec,
        pl.BlockSpec((tn, tk), lambda n, k, *pf: (n, k)),                      # weight
        pl.BlockSpec((None, tn, tk), lambda n, k, *pf: (pf[0][0], n, k)),      # weight_masks[idx]
    ]
    if use_additive:
        operands.append(pad_nk(params["weight_additive_masks"], weight_store_dtype))
        if use_attention:
            # full A slab needed for the attention reduction ([idx] term folded in)
            in_specs.append(pl.BlockSpec((A, tn, tk), lambda n, k, *pf: (0, n, k)))
        else:
            in_specs.append(
                pl.BlockSpec((None, tn, tk), lambda n, k, *pf: (pf[0][0], n, k)))
    if use_bias:
        operands.append(pad_n(params["bias"]).reshape(1, N_pad).astype(jnp.float32))
        in_specs.append(pl.BlockSpec((1, tn), lambda n, k, *pf: (0, n)))
        operands.append(pad_n(params["bias_masks"]).reshape(A, 1, N_pad).astype(jnp.float32))
        in_specs.append(
            pl.BlockSpec((None, 1, tn), lambda n, k, *pf: (pf[0][0], 0, n)))
        if use_additive and use_attention:
            operands.append(pad_n(params["bias_additive_masks"]).astype(jnp.float32))
            in_specs.append(pl.BlockSpec((A, tn), lambda n, k, *pf: (0, n)))

    # ---- VMEM limit: above v5e's 16 MiB default, below the physical cap -----
    vmem_limit = int(min(vmem_cap - (16 << 20),
                         max(step_bytes(tk) + (8 << 20), 32 << 20)))

    # ---- cost estimate so XLA can schedule around the call -------------------
    flops = 2 * B * N_pad * K_pad + 2 * (1 + w_streams) * N_pad * K_pad
    transcendentals = N_pad * K_pad + (N_pad if use_bias else 0)
    bytes_accessed = (w_streams * N_pad * K_pad * w_item
                      + B * K_pad * jnp.dtype(x.dtype).itemsize
                      + B * N_pad * jnp.dtype(out_dtype).itemsize
                      + (3 * A * N_pad * 4 if use_bias else 0))
    cost = pl.CostEstimate(flops=int(flops),
                           transcendentals=int(transcendentals),
                           bytes_accessed=int(bytes_accessed))

    kernel = _make_kernel(use_additive, use_attention, use_bias, A, n_pf,
                          x_resident, tk)

    out_p = pl.pallas_call(
        kernel,
        out_shape=jax.ShapeDtypeStruct((B, N_pad), out_dtype),
        grid_spec=pltpu.PrefetchScalarGridSpec(
            num_scalar_prefetch=n_pf,
            grid=grid,
            in_specs=in_specs,
            out_specs=pl.BlockSpec((B, tn), lambda n, k, *pf: (0, n)),
            scratch_shapes=[pltpu.VMEM((B, tn), jnp.float32)],
        ),
        compiler_params=pltpu.CompilerParams(
            dimension_semantics=("parallel", "arbitrary"),
            vmem_limit_bytes=vmem_limit),
        cost_estimate=cost,
    )(*prefetch, *operands)

    return out_p[:, :N]


def init_params(key, in_features, out_features, num_masks,
                bias=True, use_additive=False, use_attention=False):
    """Deterministic init matching MaskedLinear.__init__ / reset_parameters shapes."""
    keys = jax.random.split(key, 8)
    bound = 1.0 / math.sqrt(in_features)  # kaiming_uniform_(a=sqrt(5)) -> U(-1/sqrt(fan_in), ..)
    p = {
        "weight": jax.random.uniform(keys[0], (out_features, in_features),
                                     jnp.float32, -bound, bound),
        "weight_masks": jax.random.normal(keys[1], (num_masks, out_features, in_features),
                                          jnp.float32),
    }
    if use_additive:
        p["weight_additive_masks"] = jax.random.normal(
            keys[2], (num_masks, out_features, in_features), jnp.float32)
    if use_attention:
        p["alpha"] = jax.random.normal(keys[3], (num_masks, num_masks), jnp.float32)
    if bias:
        p["bias"] = jax.random.uniform(keys[4], (out_features,), jnp.float32, -bound, bound)
        p["bias_masks"] = jax.random.normal(keys[5], (num_masks, out_features), jnp.float32)
        if use_additive:
            p["bias_additive_masks"] = jax.random.normal(
                keys[6], (num_masks, out_features), jnp.float32)
    return p


def reference_forward(idx, x, p, *, use_additive=False, use_attention=False):
    """Pure-JAX replica of MaskedLinear.forward for validation."""
    ow = p["weight"] * jax.nn.sigmoid(p["weight_masks"][idx])
    ca = None
    if use_additive:
        ow = ow + p["weight_additive_masks"][idx]
        if use_attention:
            ca = p["alpha"][idx].reshape(-1)
            ow = ow + jnp.einsum("a,abc->bc", ca, p["weight_additive_masks"])
    ob = None
    if "bias" in p:
        ob = p["bias"] * jax.nn.sigmoid(p["bias_masks"][idx])
        if use_additive:
            ob = ob + p["bias_additive_masks"][idx][idx]   # scalar, as in reference
            if use_attention:
                ob = ob + jnp.einsum("a,ab->b", ca, p["bias_additive_masks"])
    y = x @ ow.T
    if ob is not None:
        y = y + ob
    return y


if __name__ == "__main__":
    key = jax.random.PRNGKey(0)
    idx = 1

    # (batch, in_features, out_features, num_masks, bias, use_additive, use_attention)
    test_cases = [
        (4, 256, 256, 3, True,  False, False),  # aligned shapes, 2 N-blocks
        (4, 256, 256, 3, True,  True,  True),   # aligned, additive + attention
        (2, 96,  80,  4, True,  True,  False),  # unaligned -> padding path
        (2, 96,  80,  4, False, True,  True),   # no bias, attention
    ]

    for (B, K, N, A, bias, add, att) in test_cases:
        kp, kx, key = jax.random.split(key, 3)
        params = init_params(kp, K, N, A, bias=bias,
                             use_additive=add, use_attention=att)
        x = jax.random.normal(kx, (B, K), jnp.float32)

        out = masked_linear_forward(idx, x, params,
                                    use_additive=add, use_attention=att)
        out = jax.block_until_ready(out)

        # Reference uses the same bf16-rounded weight storage so the comparison
        # isolates kernel correctness from the (intentional) storage precision.
        ref_params = dict(params)
        for name in ("weight", "weight_masks", "weight_additive_masks"):
            if name in ref_params:
                ref_params[name] = ref_params[name].astype(jnp.bfloat16).astype(jnp.float32)
        ref = reference_forward(idx, x, ref_params,
                                use_additive=add, use_attention=att)

        assert out.shape == (B, N), f"shape mismatch {out.shape} vs {(B, N)}"
        rel = float(jnp.max(jnp.abs(out - ref)) / (jnp.max(jnp.abs(ref)) + 1e-6))
        assert rel < 2e-2, (
            f"mismatch rel={rel} for B={B} K={K} N={N} A={A} "
            f"bias={bias} additive={add} attention={att}")

    print("KERNEL_OK")
</pallas_src>

<mosaic_0001>
module attributes {stable_mosaic.version = 11 : i64} {
  func.func @kernel(%arg0: i32, %arg1: i32, %arg2: memref<1xi32, #tpu.memory_space<smem>>, %arg3: memref<4x256xf32, #tpu.memory_space<vmem>>, %arg4: memref<128x256xbf16, #tpu.memory_space<vmem>>, %arg5: memref<1x128x256xbf16, #tpu.memory_space<vmem>>, %arg6: memref<1x128xf32, #tpu.memory_space<vmem>>, %arg7: memref<1x1x128xf32, #tpu.memory_space<vmem>>, %arg8: memref<4x128xf32, #tpu.memory_space<vmem>>, %arg9: memref<4x128xf32, #tpu.memory_space<vmem>>) attributes {dimension_semantics = [#tpu.dimension_semantics<parallel>, #tpu.dimension_semantics<arbitrary>], iteration_bounds = array<i64: 2, 1>, scalar_prefetch = 1 : i64, scratch_operands = 1 : i64, tpu.core_type = #tpu.core_type<tc>, window_params = [{pipeline_mode = #tpu.pipeline_mode<synchronous>, transform_indices = @transform_0, window_bounds = array<i64: 4, 256>}, {transform_indices = @transform_1, window_bounds = array<i64: 128, 256>}, {transform_indices = @transform_2, window_bounds = array<i64: 1, 128, 256>}, {transform_indices = @transform_3, window_bounds = array<i64: 1, 128>}, {transform_indices = @transform_4, window_bounds = array<i64: 1, 1, 128>}, {transform_indices = @transform_5, window_bounds = array<i64: 4, 128>}]} {
    %c0_i32 = arith.constant 0 : i32
    %0 = arith.cmpi eq, %arg1, %c0_i32 : i32
    %1 = arith.extui %0 : i1 to i32
    %c0_i32_0 = arith.constant 0 : i32
    %2 = arith.cmpi ne, %1, %c0_i32_0 : i32
    scf.if %2 {
      %cst_13 = arith.constant 0.000000e+00 : f32
      %25 = vector.broadcast %cst_13 : f32 to vector<4x128xf32>
      %c0_14 = arith.constant 0 : index
      %c0_15 = arith.constant 0 : index
      %26 = vector.load %arg9[%c0_14, %c0_15] : memref<4x128xf32, #tpu.memory_space<vmem>>, vector<4x128xf32>
      tpu.vector_store %arg9[%c0_14, %c0_15], %25 {strides = array<i32>} : memref<4x128xf32, #tpu.memory_space<vmem>>, vector<4x128xf32>,
    } else {
    }
    %c0 = arith.constant 0 : index
    %c0_1 = arith.constant 0 : index
    %3 = vector.load %arg4[%c0, %c0_1] : memref<128x256xbf16, #tpu.memory_space<vmem>>, vector<128x256xbf16>
    %4 = arith.extf %3 : vector<128x256xbf16> to vector<128x256xf32>
    %c0_2 = arith.constant 0 : index
    %c0_3 = arith.constant 0 : index
    %c0_4 = arith.constant 0 : index
    %5 = vector.load %arg5[%c0_2, %c0_3, %c0_4] : memref<1x128x256xbf16, #tpu.memory_space<vmem>>, vector<1x128x256xbf16>
    %6 = vector.shape_cast %5 : vector<1x128x256xbf16> to vector<128x256xbf16>
    %7 = arith.extf %6 : vector<128x256xbf16> to vector<128x256xf32>
    %8 = arith.negf %7 : vector<128x256xf32>
    %9 = math.exp %8 : vector<128x256xf32>
    %cst = arith.constant 1.000000e+00 : f32
    %10 = vector.broadcast %cst : f32 to vector<128x256xf32>
    %11 = arith.addf %10, %9 : vector<128x256xf32>
    %12 = arith.divf %10, %11 : vector<128x256xf32>
    %13 = arith.mulf %4, %12 : vector<128x256xf32>
    %c256_i32 = arith.constant 256 : i32
    %14 = arith.muli %arg1, %c256_i32 : i32
    %15 = tpu.assume_multiple %14, 128 : i32
    %c0_5 = arith.constant 0 : index
    %16 = arith.index_cast %15 : i32 to index
    %17 = vector.load %arg3[%c0_5, %16] : memref<4x256xf32, #tpu.memory_space<vmem>>, vector<4x256xf32>
    %c0_6 = arith.constant 0 : index
    %c0_7 = arith.constant 0 : index
    %18 = vector.load %arg9[%c0_6, %c0_7] : memref<4x128xf32, #tpu.memory_space<vmem>>, vector<4x128xf32>
    %cst_8 = arith.constant dense<0.000000e+00> : vector<4x128xf32>
    %19 = tpu.matmul %17, %13, %cst_8 {dimension_numbers = #tpu.dot_dimension_numbers<[1], [1], [0], [0], [0, 0, 1, 0], [], []>} : vector<4x256xf32>, vector<128x256xf32>, vector<4x128xf32> -> vector<4x128xf32>
    %20 = arith.addf %18, %19 : vector<4x128xf32>
    %c0_9 = arith.constant 0 : index
    %c0_10 = arith.constant 0 : index
    %21 = vector.load %arg9[%c0_9, %c0_10] : memref<4x128xf32, #tpu.memory_space<vmem>>, vector<4x128xf32>
    tpu.vector_store %arg9[%c0_9, %c0_10], %20 {strides = array<i32>} : memref<4x128xf32, #tpu.memory_space<vmem>>, vector<4x128xf32>,
    %c0_i32_11 = arith.constant 0 : i32
    %22 = arith.cmpi eq, %arg1, %c0_i32_11 : i32
    %23 = arith.extui %22 : i1 to i32
    %c0_i32_12 = arith.constant 0 : i32
    %24 = arith.cmpi ne, %23, %c0_i32_12 : i32
    scf.if %24 {
      %c0_13 = arith.constant 0 : index
      %c0_14 = arith.constant 0 : index
      %25 = vector.load %arg9[%c0_13, %c0_14] : memref<4x128xf32, #tpu.memory_space<vmem>>, vector<4x128xf32>
      %c0_15 = arith.constant 0 : index
      %c0_16 = arith.constant 0 : index
      %26 = vector.load %arg6[%c0_15, %c0_16] : memref<1x128xf32, #tpu.memory_space<vmem>>, vector<1x128xf32>
      %c0_17 = arith.constant 0 : index
      %c0_18 = arith.constant 0 : index
      %c0_19 = arith.constant 0 : index
      %27 = vector.load %arg7[%c0_17, %c0_18, %c0_19] : memref<1x1x128xf32, #tpu.memory_space<vmem>>, vector<1x1x128xf32>
      %28 = vector.shape_cast %27 : vector<1x1x128xf32> to vector<1x128xf32>
      %29 = arith.negf %28 : vector<1x128xf32>
      %30 = math.exp %29 : vector<1x128xf32>
      %cst_20 = arith.constant 1.000000e+00 : f32
      %31 = vector.broadcast %cst_20 : f32 to vector<1x128xf32>
      %32 = arith.addf %31, %30 : vector<1x128xf32>
      %33 = arith.divf %31, %32 : vector<1x128xf32>
      %34 = arith.mulf %26, %33 : vector<1x128xf32>
      %35 = vector.broadcast %34 : vector<1x128xf32> to vector<4x128xf32>
      %36 = arith.addf %25, %35 : vector<4x128xf32>
      %c0_21 = arith.constant 0 : index
      %c0_22 = arith.constant 0 : index
      %37 = vector.load %arg8[%c0_21, %c0_22] : memref<4x128xf32, #tpu.memory_space<vmem>>, vector<4x128xf32>
      tpu.vector_store %arg8[%c0_21, %c0_22], %36 {strides = array<i32>} : memref<4x128xf32, #tpu.memory_space<vmem>>, vector<4x128xf32>,
    } else {
    }
    return
  }
  func.func @transform_0(%arg0: i32, %arg1: i32, %arg2: memref<1xi32, #tpu.memory_space<smem>>) -> (i32, i32) {
    %c0_i32 = arith.constant 0 : i32
    %c0_i32_0 = arith.constant 0 : i32
    %c0_i32_1 = arith.constant 0 : i32
    return %c0_i32, %c0_i32_0 : i32, i32
  }
  func.func @transform_1(%arg0: i32, %arg1: i32, %arg2: memref<1xi32, #tpu.memory_space<smem>>) -> (i32, i32) {
    %c0_i32 = arith.constant 0 : i32
    return %arg0, %arg1 : i32, i32
  }
  func.func @transform_2(%arg0: i32, %arg1: i32, %arg2: memref<1xi32, #tpu.memory_space<smem>>) -> (i32, i32, i32) {
    %c0 = arith.constant 0 : index
    %0 = memref.load %arg2[%c0] : memref<1xi32, #tpu.memory_space<smem>>
    %c0_i32 = arith.constant 0 : i32
    return %0, %arg0, %arg1 : i32, i32, i32
  }
  func.func @transform_3(%arg0: i32, %arg1: i32, %arg2: memref<1xi32, #tpu.memory_space<smem>>) -> (i32, i32) {
    %c0_i32 = arith.constant 0 : i32
    %c0_i32_0 = arith.constant 0 : i32
    return %c0_i32, %arg0 : i32, i32
  }
  func.func @transform_4(%arg0: i32, %arg1: i32, %arg2: memref<1xi32, #tpu.memory_space<smem>>) -> (i32, i32, i32) {
    %c0 = arith.constant 0 : index
    %0 = memref.load %arg2[%c0] : memref<1xi32, #tpu.memory_space<smem>>
    %c0_i32 = arith.constant 0 : i32
    %c0_i32_0 = arith.constant 0 : i32
    return %0, %c0_i32, %arg0 : i32, i32, i32
  }
  func.func @transform_5(%arg0: i32, %arg1: i32, %arg2: memref<1xi32, #tpu.memory_space<smem>>) -> (i32, i32) {
    %c0_i32 = arith.constant 0 : i32
    %c0_i32_0 = arith.constant 0 : i32
    return %c0_i32, %arg0 : i32, i32
  }
}

</mosaic_0001>

<bundles_post_ra>
// kernel: tpu_custom_call.1
= control target key start
LH: loop header
LB: loop body
LE: loop exit
PB: predicated region body
PF: predicated region fallthrough
CT: control target
= control target key end

     0   :  { %s1978_s0 = inlined_call_operand.<no memory space> [shape: s32[1], index: 0, kind: input, shape index: {}]   ;;  %s1979_s1 = inlined_call_operand.hbm [shape: f32[4,256], index: 1, kind: input, shape index: {}]   ;;  %s1980_s2 = inlined_call_operand.hbm [shape: bf16[256,256], index: 2, kind: input, shape index: {}]   ;;  %s1981_s3 = inlined_call_operand.hbm [shape: bf16[3,256,256], index: 3, kind: input, shape index: {}]   ;;  %s1982_s4 = inlined_call_operand.vmem [shape: f32[1,256], index: 4, kind: input, shape index: {}]   ;;  %s1983_s5 = inlined_call_operand.vmem [shape: f32[3,1,256], index: 5, kind: input, shape index: {}]   ;;  %s1984_s6 = inlined_call_operand.hbm [shape: f32[4,256], index: 6, kind: output, shape index: {}]  }
   0x1   :  { %2004 = sst [smem:[#allocation24_spill]] %s1980_s2 }
   0x2   :  { %2005 = sst [smem:[#allocation25_spill]] %s1984_s6 }
   0x3   :  { %11 = sst [smem:[#allocation4]] %s1978_s0 }
   0x4   :  { %12 = vsyncpa [#allocation6], 0 }
   0x5   :  { %13 = vsyncpa [#allocation9], 0 }
   0x6   :  { %15 = vsyncpa [#allocation9 + $0x1], 0 }
   0x7   :  { %16 = vsyncpa [#allocation7], 0 }
   0x8   :  { %18 = vsyncpa [#allocation7 + $0x1], 0  ;;  %s1543_s23 = smov 0   ;;  %s1545_s24 = smov 0  }
   0x9   :  { %s1547_s25 = smov 0   ;;  %s1549_s26 = smov 0  }
   0xa   :  { %s1551_s27 = smov 0   ;;  %s1553_s28 = smov 0  }
   0xb   :  { %s1555_s29 = smov 0   ;;  %s1557_s0 = smov 0  }
   0xc   :  { %s1559_s30 = smov 0  }
   0xd LB: > { %2006 = sst [smem:[#allocation16_spill]] %s1476_s26  ;;  %s36_s7 = sadd.s32 1, %s1492_s0  ;;  %s1496_s30 = sphi %s1559_s30, %s24_s30   ;;  %s1492_s0 = sphi %s1557_s0, %s2047_s0   ;;  %s1488_s29 = sphi %s1555_s29, %s2046_s29   ;;  %s1484_s28 = sphi %s1553_s28, %s2045_s28   ;;  %s1480_s27 = sphi %s1551_s27, %s2052_s27   ;;  %s1476_s26 = sphi %s1549_s26, %s2051_s26   ;;  %s1472_s25 = sphi %s1547_s25, %s2050_s25   ;;  %s1468_s24 = sphi %s1545_s24, %s2049_s24   ;;  %s1464_s23 = sphi %s1543_s23, %s2048_s23  }
   0xe   : > { %2007 = sst [smem:[#allocation17_spill]] %s1484_s28  ;;  %s66_s8 = sadd.s32 1, %s1484_s28 }
   0xf   : > { %2008 = sst [smem:[#allocation18_spill]] %s1492_s0  ;;  %p38_p0 = scmp.ge.s32.totalorder %s36_s7, 2 }
  0x10   : > { %2009 = sst [smem:[#allocation19_spill]] %s1496_s30  ;;  %p1986_p1 = scmp.ne.s32.totalorder %s1484_s28, %s1480_s27 }
  0x11   : > { %p1987_p2 = scmp.eq.s32.totalorder %s1496_s30, 0  ;;  %s1593_s9 = sld [smem:[#allocation4]] }
  0x12   : > { %s2054_s7 = smov (%p38_p0, %s36_s7), 0  ;;  %p1985_p5 = scmp.lt.s32.totalorder %s1496_s30, 2 }
  0x13   : > { %2010 = sst [smem:[#allocation20_spill]] %s2054_s7  ;;  %p1602_p3 = por %p1987_p2, %p1986_p1 }
  0x14   : > { %s61_s11 = ssub.s32 %s1492_s0, %s2054_s7  ;;  %s228_s13 = sand.u32 1, %s1496_s30  }
  0x15   : > { %p1610_p6 = scmp.eq.s32.totalorder %s61_s11, 0  ;;  %s230_s14 = sand.u32 1, %s1484_s28  }
  0x16   : > { %s969_s16 = sshll.u32 %s230_s14, 7  ;;  %s1022_s17 = sshll.u32 %s1492_s0, 11 }
  0x17   : > { %s1619_s15 = scalar_select %p1610_p6, %s1484_s28, %s66_s8  }
  0x18   : > { %s2014_s2 = sld [smem:[#allocation24_spill]]  ;;  %s232_s21 = scalar_lea.vmem [#allocation8], %s969_s16 }
  0x19   : > { %2013 = sst [smem:[#allocation21_spill]] %s1619_s15  ;;  %s242_s22 = sshll.u32 %s232_s21, 4  ;;  %s1627_s22 = int_to_ptr.vmem [resolvable:$true] %s242_s22 }
  0x1a   : > { %p1633_p7 = pnand %p1985_p5, %p1602_p3  ;;  %s1637_s11 = scalar_lea.sflag [#allocation9], %s228_s13 }
  0x1c   : > { %p1296_p9 = pneg %p1633_p7 }
  0x1e   : > { %s1625_s20 = scalar_lea.hbm %s2014_s2, %s1022_s17  ;;  %s1299_s10 = scalar_lea.hbm %s2014_s2, 4096 }
  0x1f   : > { %s1294_s14 = scalar_lea.hbm %s1625_s20, 2048  ;;  %p1300_p12 = scmp.lt.u32.totalorder %s1625_s20, %s2014_s2 }
  0x20   : > { %p1295_p8 = scmp.ne.s32.totalorder %s1625_s20, %s1294_s14  ;;  %p1301_p13 = scmp.lt.u32.totalorder %s1299_s10, %s1294_s14 }
  0x21   : > { %p1303_p3 = scmp.lt.u32.totalorder %s1294_s14, %s1625_s20 }
  0x22   : > { %p1297_p10 = pnand %p1296_p9, %p1295_p8  ;;  %p1302_p0 = por %p1301_p13, %p1300_p12 }
  0x24   : > { %p1298_p11 = pneg %p1297_p10  ;;  %p1304_p4 = por %p1303_p3, %p1302_p0 }
  0x26   : > { %p1305_p5 = pnand %p1304_p4, %p1298_p11 }
  0x28   : > { %1308 = shalt.err (!%p1305_p5)
}
  0x29   : > { %s1309_s13 = scalar_lea.vmem %s1627_s22, 2048  ;;  %s1498_s21 = smov [#allocation8]  }
  0x2a   : > { %p1310_p8 = scmp.ne.s32.totalorder %s1627_s22, %s1309_s13  ;;  %s1314_s16 = sshll.u32 %s1498_s21, 4  ;;  %s1315_s16 = int_to_ptr.vmem [resolvable:$false] %s1314_s16 }
  0x2b   : > { %s1316_s17 = scalar_lea.vmem %s1315_s16, 4096  ;;  %p1317_p2 = scmp.lt.s32.totalorder %s1627_s22, %s1315_s16 }
  0x2c   : > { %p1312_p10 = pnand %p1310_p8, %p1296_p9  ;;  %p1318_p12 = scmp.lt.s32.totalorder %s1316_s17, %s1309_s13 }
  0x2e   : > { %p1313_p1 = pneg %p1312_p10  ;;  %p1319_p13 = por %p1318_p12, %p1317_p2 }
  0x30   : > { %p1320_p0 = pnand %p1319_p13, %p1313_p1 }
  0x32   : > { %1323 = shalt.err (!%p1320_p0)
}
  0x33   : > { %s1989_s14 = smov 128   ;;  %s1990_s10 = smov 8  }
  0x34   : > { %1073 = dma.hbm_to_vmem [thread:$0]  (!%p1633_p7), %s1625_s20, 2048, %s1627_s22, %s1637_s11, %s1989_s14, %s1989_s14, %s1990_s10  }
  0x35   : > { %s1669_s18 = sadd.s32 4294967295, %s1496_s30   ;;  %s965_s19 = sadd.s32 4294967294, %s1496_s30  }
  0x36   : > { %p79_p1 = scmp.ne.s32.totalorder %s1480_s27, %s1476_s26  ;;  %p1999_p2 = scmp.eq.s32.totalorder %s1669_s18, 0 }
  0x37   : > { %s98_s13 = sadd.s32 1, %s1472_s25  ;;  %p105_p5 = scmp.ne.s32.totalorder %s1472_s25, %s1468_s24 }
  0x38   : > { %s1679_s21 = scalar_select %p1610_p6, %s1472_s25, %s98_s13  }
  0x39   : > { %p1683_p4 = por %p1999_p2, %p79_p1  ;;  %p111_p7 = scmp.ne.s32.totalorder %s1468_s24, %s1464_s23 }
  0x3a   : > { %2016 = sst [smem:[#allocation22_spill]] %s1679_s21  ;;  %p191_p9 = scmp.eq.s32.totalorder %s1669_s18, 1 }
  0x3b   : > { %s2017_s8 = scalar_select %p1683_p4, 1, 0 }
  0x3c   : > { %p2018_p11 = scmp.eq.s32.totalorder %s1496_s30, 0  ;;  %p197_p8 = scmp.eq.s32.totalorder %s965_s19, 1 }
  0x3d   : > { %p1696_p10 = por %p111_p7, %p1999_p2  ;;  %p2020_p6 = scmp.ne.s32.totalorder %s1484_s28, %s1480_s27 }
  0x3e   : > { %p107_p3 = por %p105_p5, %p2018_p11  ;;  %p1707_p13 = por %p197_p8, %p79_p1 }
  0x3f   : > { %s2019_s12 = scalar_select %p1696_p10, 1, 0 }
  0x40   : > { %p1703_p12 = por %p191_p9, %p2020_p6  ;;  %p966_p0 = scmp.ge.s32.totalorder %s1496_s30, 1 }
  0x41   : > { %s2022_s22 = scalar_select %p1707_p13, 1, 0 }
  0x42   : > { %s2021_s20 = scalar_select %p1703_p12, 1, 0 }
  0x43   : > { %2023 = sst [smem:[#allocation23_spill]] %s2022_s22  ;;  %p204_p4 = scmp.lt.s32.totalorder %s1496_s30, 3 }
  0x44   : > { %p2024_p5 = scmp.lt.s32.totalorder %s1496_s30, 2  ;;  %s1501_s17 = smov [#allocation5]  }
  0x45   : > { %p1719_p7 = pnand %p966_p0, %p204_p4  ;;  %s217_s19 = sshll.u32 %s1501_s17, 4  ;;  %s218_s19 = int_to_ptr.vmem [resolvable:$true] %s217_s19 }
  0x46   : > { %p1715_p11 = pnand %p2024_p5, %p107_p3  ;;  %s254_s13 = sand.u32 1, %s1472_s25  }
  0x47   : > { %s2026_s16 = scalar_select %p1719_p7, 1, 0 }
  0x48   : > { %s2025_s23 = scalar_select %p1715_p11, 1, 0 }
  0x49   : > { %p1066_p1 = pneg %p1719_p7  ;;  %s973_s14 = sshll.u32 %s254_s13, 7 }
  0x4a   : > { %s1023_s10 = sshll.u32 %s1492_s0, 5  ;;  %s976_s7 = sshll.u32 %s1593_s9, 6 }
  0x4b   : > { %p1729_p9 = pnand %p1066_p1, %p1999_p2  ;;  %s256_s15 = scalar_lea.vmem [#allocation10], %s973_s14 }
  0x4c   : > { %s269_s28 = sshll.u32 %s256_s15, 4  ;;  %s266_s21 = sadd.s32 %s1023_s10, %s976_s7  ;;  %s1750_s28 = int_to_ptr.vmem [resolvable:$true] %s269_s28 }
  0x4d   : > { %s1324_s17 = scalar_lea.hbm %s1979_s1, 128  ;;  %p1326_p3 = pneg %p1729_p9 }
  0x4e   : > { %p1325_p4 = scmp.ne.s32.totalorder %s1979_s1, %s1324_s17  ;;  %p1331_p0 = scmp.lt.u32.totalorder %s1324_s17, %s1979_s1 }
  0x50   : > { %p1327_p8 = pnand %p1326_p3, %p1325_p4 }
  0x52   : > { %p1328_p6 = pneg %p1327_p8 }
  0x54   : > { %p1333_p5 = pnand %p1331_p0, %p1328_p6 }
  0x56   : > { %1336 = shalt.err (!%p1333_p5)
}
  0x57   : > { %s1337_s9 = scalar_lea.vmem %s218_s19, 128  ;;  %p1345_p12 = scmp.lt.s32.totalorder %s218_s19, %s218_s19 }
  0x58   : > { %p1338_p1 = scmp.ne.s32.totalorder %s218_s19, %s1337_s9  ;;  %p1346_p10 = scmp.lt.s32.totalorder %s1337_s9, %s1337_s9 }
  0x5a   : > { %p1340_p2 = pnand %p1338_p1, %p1326_p3  ;;  %p1347_p7 = por %p1346_p10, %p1345_p12 }
  0x5c   : > { %p1341_p13 = pneg %p1340_p2 }
  0x5e   : > { %p1348_p11 = pnand %p1347_p7, %p1341_p13 }
  0x60   : > { %1351 = shalt.err (!%p1348_p11)
}
  0x61   : > { %1069 = dma.hbm_to_vmem [thread:$0]  (!%p1729_p9), %s1979_s1, 128, %s218_s19, [#allocation6]  }
  0x62   : > { %s977_s0 = sshll.u32 %s266_s21, 6  ;;  %p2028_p10 = scmp.ne.s32.totalorder %s2025_s23, 0 }
  0x63   : > { %s1755_s15 = scalar_lea.hbm %s1981_s3, %s977_s0  ;;  %s1357_s21 = scalar_lea.hbm %s1981_s3, 12288 }
  0x64   : > { %s1352_s14 = scalar_lea.hbm %s1755_s15, 2048  ;;  %p1354_p12 = pneg %p2028_p10 }
  0x65   : > { %p1353_p2 = scmp.ne.s32.totalorder %s1755_s15, %s1352_s14  ;;  %p1358_p7 = scmp.lt.u32.totalorder %s1755_s15, %s1981_s3 }
  0x66   : > { %p1359_p9 = scmp.lt.u32.totalorder %s1357_s21, %s1352_s14  ;;  %p1361_p3 = scmp.lt.u32.totalorder %s1352_s14, %s1755_s15 }
  0x67   : > { %p1355_p13 = pnand %p1354_p12, %p1353_p2 }
  0x68   : > { %p1360_p4 = por %p1359_p9, %p1358_p7 }
  0x69   : > { %p1356_p11 = pneg %p1355_p13 }
  0x6a   : > { %p1362_p8 = por %p1361_p3, %p1360_p4 }
  0x6c   : > { %p1363_p6 = pnand %p1362_p8, %p1356_p11 }
  0x6e   : > { %1366 = shalt.err (!%p1363_p6)
}
  0x6f   : > { %s1367_s17 = scalar_lea.vmem %s1750_s28, 2048  ;;  %s1502_s13 = smov [#allocation10]  }
  0x70   : > { %p1368_p0 = scmp.ne.s32.totalorder %s1750_s28, %s1367_s17  ;;  %s1372_s9 = sshll.u32 %s1502_s13, 4  ;;  %s1373_s9 = int_to_ptr.vmem [resolvable:$false] %s1372_s9 }
  0x71   : > { %s1374_s6 = scalar_lea.vmem %s1373_s9, 4096  ;;  %p1375_p2 = scmp.lt.s32.totalorder %s1750_s28, %s1373_s9 }
  0x72   : > { %p1370_p5 = pnand %p1368_p0, %p1354_p12  ;;  %p1376_p13 = scmp.lt.s32.totalorder %s1374_s6, %s1367_s17 }
  0x74   : > { %p1371_p1 = pneg %p1370_p5  ;;  %p1377_p7 = por %p1376_p13, %p1375_p2 }
  0x76   : > { %p1378_p9 = pnand %p1377_p7, %p1371_p1 }
  0x78   : > { %1381 = shalt.err (!%p1378_p9)
}
  0x79   : > { %s2029_s26 = smov 8   ;;  %s2030_s0 = smov 128  }
  0x7a   : > { %1076 = dma.hbm_to_vmem [thread:$0]  (!%p2028_p10), %s1755_s15, 2048, %s1750_s28, %s1637_s11, %s2030_s0, %s2030_s0, %s2029_s26  }
  0x7b   : > { %p2031_p12 = scmp.ne.s32.totalorder %s2026_s16, 0 }
  0x7c   : > { %p2032_p11 = scmp.eq.s32.totalorder (!%p2031_p12), %s1669_s18, 0 }
  0x7d   : > { %299 = sbr.rel (%p2031_p12) target bundleno = 481 (0x1e1), region = 40 }
  0x84   : > { %1447 = dma.done.wait (%p2032_p11), [#allocation6], 128   ;;  %p2033_p4 = pmov %p2032_p11 }
  0x85   : > { %s305_s23 = sand.u32 1, %s1669_s18   ;;  %s1794_s30 = sand.u32 1, %s1480_s27  }
  0x86   : > { %1449 = vsyncadd (%p2033_p4), [#allocation6], 4294967168  ;;  %s980_s7 = sshll.u32 %s1794_s30, 7  ;;  %s306_s14 = scalar_lea.sflag [#allocation9], %s305_s23 }
  0x87   : > { %s1797_s2 = scalar_lea.vmem [#allocation8], %s980_s7  ;;  %p2034_p10 = scmp.ne.s32.totalorder %s2017_s8, 0 }
  0x89   : > { %1451 = dma.done.wait (%p2034_p10), %s306_s14, 2048  }
  0x8a   : > { %1453 = vsyncadd (%p2034_p10), %s306_s14, 4294965248  ;;  %s316_s28 = sand.u32 1, %s1468_s24   ;;  %p2035_p3 = scmp.ne.s32.totalorder %s2019_s12, 0 }
  0x8b   : > { %s981_s11 = sshll.u32 %s316_s28, 7 }
  0x8c   : > { %s1804_s16 = scalar_lea.vmem [#allocation10], %s981_s11 }
  0x8d   : > { %1455 = dma.done.wait (%p2035_p3), %s306_s14, 2048  }
  0x8e   : > { %1457 = vsyncadd (%p2035_p3), %s306_s14, 4294965248  ;;  %v1503_v0 = vmov 0.0   ;;  %v431_v1 = vld [vmem:[%s1804_s16] sm:$0xff]  ;;  %v432_v2 = vld [vmem:[%s1804_s16 + $0x8] sm:$0xff]  ;;  %s369_s18 = sld [smem:[#allocation4]]  ;;  %p366_p6 = scmp.lt.s32.totalorder %s1488_s29, 1 }
  0x8f   : > { %382 = vst [vmem:[#allocation2] sm:$0xf] %v1503_v0  ;;  %v448_v3 = vunpack.c.h.bf16 %v431_v1  ;;  %v450_v4 = vunpack.c.h.bf16 %v432_v2  ;;  %v447_v5 = vunpack.c.l.bf16 %v431_v1  ;;  %v449_v6 = vunpack.c.l.bf16 %v432_v2  ;;  %v433_v7 = vld [vmem:[%s1804_s16 + $0x10] sm:$0xff]  ;;  %v434_v8 = vld [vmem:[%s1804_s16 + $0x18] sm:$0xff]  ;;  %v435_v11 = vld [vmem:[%s1804_s16 + $0x20] sm:$0xff]  ;;  %s982_s9 = sshll.u32 %s1794_s30, 2 }
  0x90   : > { %v452_v10 = vunpack.c.h.bf16 %v433_v7  ;;  %v454_v15 = vunpack.c.h.bf16 %v434_v8  ;;  %v436_v17 = vld [vmem:[%s1804_s16 + $0x28] sm:$0xff]  ;;  %v451_v19 = vunpack.c.l.bf16 %v433_v7  ;;  %v453_v20 = vunpack.c.l.bf16 %v434_v8  ;;  %v1817_v25 = vld [vmem:[%s1804_s16 + $0x30] sm:$0xff]  ;;  %v1821_v36 = vld [vmem:[%s1797_s2] sm:$0xff]  ;;  %s367_s8 = scalar_select %p366_p6, %s1488_s29, 1 }
  0x91   : > { %v985_v9 = vmul.f32 -1.442695, %v448_v3  ;;  %v987_v12 = vmul.f32 -1.442695, %v450_v4  ;;  %v984_v13 = vmul.f32 -1.442695, %v447_v5  ;;  %v456_v21 = vunpack.c.h.bf16 %v435_v11 }
  0x92   : > { %v986_v14 = vmul.f32 -1.442695, %v449_v6  ;;  %v989_v16 = vmul.f32 -1.442695, %v452_v10  ;;  %v991_v18 = vmul.f32 -1.442695, %v454_v15  ;;  %v458_v24 = vunpack.c.h.bf16 %v436_v17  ;;  %s368_s13 = scalar_lea.vmem %s1982_s4, %s367_s8 }
  0x93   : > { %1162 = vpow2.f32 %v985_v9  ;;  %v988_v22 = vmul.f32 -1.442695, %v451_v19  ;;  %v990_v23 = vmul.f32 -1.442695, %v453_v20  ;;  %v993_v26 = vmul.f32 -1.442695, %v456_v21 }
  0x94   : > { %1164 = vpow2.f32 %v987_v12  ;;  %v995_v27 = vmul.f32 -1.442695, %v458_v24  ;;  %v455_v28 = vunpack.c.l.bf16 %v435_v11  ;;  %v457_v29 = vunpack.c.l.bf16 %v436_v17  ;;  %v1824_v37 = vld [vmem:[%s1797_s2 + $0x8] sm:$0xff]  ;;  %v1827_v43 = vld [vmem:[%s1797_s2 + $0x10] sm:$0xff]  ;;  %v438_v44 = vld [vmem:[%s1804_s16 + $0x38] sm:$0xff]  ;;  %p370_p8 = scmp.lt.s32.totalorder %s369_s18, 2 }
  0x95   : > { %1166 = vpow2.f32 %v984_v13  ;;  %v460_v30 = vunpack.c.h.bf16 %v1817_v25  ;;  %v400_v46 = vunpack.c.h.bf16 %v1821_v36  ;;  %v402_v47 = vunpack.c.h.bf16 %v1824_v37  ;;  %v1833_v49 = vld [vmem:[%s1797_s2 + $0x18] sm:$0xff]  ;;  %v1839_v57 = vld [vmem:[%s1797_s2 + $0x20] sm:$0xff]  ;;  %v440_v4 = vld [vmem:[%s1804_s16 + $0x48] sm:$0xff]  ;;  %s1018_s6 = sshll.u32 %s1488_s29, 6  ;;  %s360_s26 = scalar_lea.vmem [#allocation11], %s982_s9 }
  0x96   : > { %1168 = vpow2.f32 %v986_v14  ;;  %v992_v31 = vmul.f32 -1.442695, %v455_v28  ;;  %v994_v32 = vmul.f32 -1.442695, %v457_v29  ;;  %v399_v51 = vunpack.c.l.bf16 %v1821_v36  ;;  %v439_v63 = vld [vmem:[%s1804_s16 + $0x40] sm:$0xff]  ;;  %v1848_v6 = vld [vmem:[%s1797_s2 + $0x28] sm:$0xff] }
  0x97   : > { %1170 = vpow2.f32 %v989_v16  ;;  %v997_v33 = vmul.f32 -1.442695, %v460_v30  ;;  %v401_v52 = vunpack.c.l.bf16 %v1824_v37  ;;  %v404_v55 = vunpack.c.h.bf16 %v1827_v43  ;;  %s2056_s18 = smov (!%p370_p8, %s369_s18), 2  ;;  %s820_s0 = sshll.u32 %s360_s26, 4  ;;  %s1922_s0 = int_to_ptr.vmem [resolvable:$true] %s820_s0 }
  0x98   : > { %1172 = vpow2.f32 %v991_v18  ;;  %v462_v58 = vunpack.c.h.bf16 %v438_v44  ;;  %v406_v60 = vunpack.c.h.bf16 %v1833_v49  ;;  %v403_v61 = vunpack.c.l.bf16 %v1827_v43  ;;  %v441_v18 = vld [vmem:[%s1804_s16 + $0x50] sm:$0xff]  ;;  %s983_s12 = sshll.u32 %s2056_s18, 1  ;;  %s2036_s14 = sld [smem:[#allocation25_spill]] }
  0x99   : > { %1174 = vpow2.f32 %v988_v22  ;;  %v405_v1 = vunpack.c.l.bf16 %v1833_v49  ;;  %v459_v3 = vunpack.c.l.bf16 %v1817_v25  ;;  %v408_v7 = vunpack.c.h.bf16 %v1839_v57  ;;  %s375_s15 = sadd.s32 %s983_s12, %s367_s8  ;;  %s807_s28 = scalar_lea.sflag [#allocation7], %s1794_s30 }
  0x9a   : > { %1176 = vpow2.f32 %v990_v23  ;;  %v461_v9 = vunpack.c.l.bf16 %v438_v44  ;;  %v999_v12 = vmul.f32 -1.442695, %v462_v58  ;;  %v464_v13 = vunpack.c.h.bf16 %v439_v63  ;;  %s376_s22 = scalar_lea.vmem %s1983_s5, %s375_s15  ;;  %s1382_s11 = scalar_lea.vmem %s1922_s0, 64 }
  0x9b   : > { %1178 = vpow2.f32 %v993_v26  ;;  %v466_v16 = vunpack.c.h.bf16 %v440_v4  ;;  %v463_v17 = vunpack.c.l.bf16 %v439_v63  ;;  %v410_v20 = vunpack.c.h.bf16 %v1848_v6  ;;  %p1383_p0 = scmp.ne.s32.totalorder %s1922_s0, %s1382_s11  ;;  %p2037_p5 = scmp.ne.s32.totalorder %s2021_s20, 0 }
  0x9c   : > { %1180 = vpow2.f32 %v995_v27  ;;  %v996_v22 = vmul.f32 -1.442695, %v459_v3  ;;  %v998_v25 = vmul.f32 -1.442695, %v461_v9  ;;  %v465_v26 = vunpack.c.l.bf16 %v440_v4  ;;  %v442_v27 = vld [vmem:[%s1804_s16 + $0x58] sm:$0xff]  ;;  %s1504_s29 = smov [#allocation11]  }
  0x9d   : > { %v1163_v34 = vpop.eup %1162  ;;  %1182 = vpow2.f32 %v992_v31  ;;  %v1001_v30 = vmul.f32 -1.442695, %v464_v13  ;;  %v468_v31 = vunpack.c.h.bf16 %v441_v18  ;;  %v407_v43 = vunpack.c.l.bf16 %v1839_v57  ;;  %p1384_p1 = pnand %p1383_p0, %p2037_p5 }
  0x9e   : > { %v1165_v35 = vpop.eup %1164  ;;  %v576_v38 = vadd.f32 1.0, %v1163_v34  ;;  %1184 = vpow2.f32 %v994_v32  ;;  %v1003_v34 = vmul.f32 -1.442695, %v466_v16 }
  0x9f   : > { %v1167_v39 = vpop.eup %1166  ;;  %v578_v40 = vadd.f32 1.0, %v1165_v35  ;;  %1186 = vpow2.f32 %v997_v33  ;;  %v1000_v35 = vmul.f32 -1.442695, %v463_v17  ;;  %p1385_p2 = pneg %p1384_p1 }
  0xa0   : > { %v1169_v41 = vpop.eup %1168  ;;  %1188 = vrcp.f32 %v576_v38  ;;  %v575_v42 = vadd.f32 1.0, %v1167_v39  ;;  %v470_v39 = vunpack.c.h.bf16 %v442_v27 }
  0xa1   : > { %v1171_v45 = vpop.eup %1170  ;;  %1190 = vrcp.f32 %v578_v40  ;;  %v577_v48 = vadd.f32 1.0, %v1169_v41  ;;  %v467_v40 = vunpack.c.l.bf16 %v441_v18  ;;  %v1855_v41 = vld [vmem:[%s1804_s16 + $0x60] sm:$0xff] }
  0xa2   : > { %v1173_v50 = vpop.eup %1172  ;;  %1192 = vrcp.f32 %v575_v42  ;;  %v580_v53 = vadd.f32 1.0, %v1171_v45  ;;  %v472_v37 = vunpack.c.h.bf16 %v1855_v41 }
  0xa3   : > { %v1175_v54 = vpop.eup %1174  ;;  %1194 = vrcp.f32 %v577_v48  ;;  %v582_v56 = vadd.f32 1.0, %v1173_v50  ;;  %v1860_v48 = vld [vmem:[%s1804_s16 + $0x68] sm:$0xff] }
  0xa4   : > { %v1177_v59 = vpop.eup %1176  ;;  %1196 = vrcp.f32 %v580_v53  ;;  %v579_v62 = vadd.f32 1.0, %v1175_v54  ;;  %v469_v53 = vunpack.c.l.bf16 %v442_v27  ;;  %v474_v63 = vunpack.c.h.bf16 %v1860_v48 }
  0xa5   : > { %v1179_v0 = vpop.eup %1178  ;;  %1198 = vrcp.f32 %v582_v56  ;;  %v581_v2 = vadd.f32 1.0, %v1177_v59  ;;  %v1007_v59 = vmul.f32 -1.442695, %v470_v39 }
  0xa6   : > { %v1181_v5 = vpop.eup %1180  ;;  %1200 = vrcp.f32 %v579_v62  ;;  %v584_v8 = vadd.f32 1.0, %v1179_v0  ;;  %v1004_v62 = vmul.f32 -1.442695, %v467_v40  ;;  %v1011_v13 = vmul.f32 -1.442695, %v474_v63 }
  0xa7   : > { %v1183_v10 = vpop.eup %1182  ;;  %1202 = vrcp.f32 %v581_v2  ;;  %v586_v11 = vadd.f32 1.0, %v1181_v5  ;;  %v1006_v5 = vmul.f32 -1.442695, %v469_v53 }
  0xa8   : > { %v1185_v14 = vpop.eup %1184  ;;  %1204 = vrcp.f32 %v584_v8  ;;  %v583_v15 = vadd.f32 1.0, %v1183_v10  ;;  %v1009_v10 = vmul.f32 -1.442695, %v472_v37 }
  0xa9   : > { %v1187_v19 = vpop.eup %1186  ;;  %1206 = vrcp.f32 %v586_v11  ;;  %v585_v21 = vadd.f32 1.0, %v1185_v14  ;;  %v1874_v11 = vld [vmem:[#allocation5] sm:$0xff] }
  0xaa   : > { %v1189_v23 = vpop.eup %1188  ;;  %1208 = vrcp.f32 %v583_v15  ;;  %v588_v24 = vadd.f32 1.0, %v1187_v19  ;;  %v711_v16 = vcombine.high %v1874_v11, %v1874_v11 }
  0xab   : > { %v1191_v28 = vpop.eup %1190  ;;  %v672_v29 = vmul.f32 %v1189_v23, %v400_v46  ;;  %1210 = vrcp.f32 %v585_v21  ;;  %v1002_v46 = vmul.f32 -1.442695, %v465_v26  ;;  %v1881_v21 = vld [vmem:[%s1797_s2 + $0x30] sm:$0xff] }
  0xac   : > { %v1193_v32 = vpop.eup %1192  ;;  %v674_v33 = vmul.f32 %v1191_v28, %v402_v47  ;;  %1212 = vpow2.f32 %v999_v12  ;;  %777 = vmatprep.mubr.f32.mxu0 %v711_v16  ;;  %v411_v40 = vunpack.c.l.bf16 %v1881_v21 }
  0xad   : > { %v1195_v36 = vpop.eup %1194  ;;  %v671_v38 = vmul.f32 %v1193_v32, %v399_v51  ;;  %1214 = vrcp.f32 %v588_v24  ;;  %v1005_v51 = vmul.f32 -1.442695, %v468_v31  ;;  %v1884_v24 = vld [vmem:[%s1797_s2 + $0x38] sm:$0xff]  ;;  %v471_v32 = vunpack.c.l.bf16 %v1855_v41 }
  0xae   : > { %v1197_v42 = vpop.eup %1196  ;;  %v1024_v44 = vpack.c.bf16 %v674_v33, %v672_v29  ;;  %v673_v45 = vmul.f32 %v1195_v36, %v401_v52  ;;  %1216 = vpow2.f32 %v996_v22  ;;  %v412_v29 = vunpack.c.h.bf16 %v1881_v21 }
  0xaf   : > { %v1199_v47 = vpop.eup %1198  ;;  %v676_v50 = vmul.f32 %v1197_v42, %v404_v55  ;;  %1218 = vpow2.f32 %v998_v25  ;;  %v413_v42 = vunpack.c.l.bf16 %v1884_v24 }
  0xb0   : > { %v1201_v54 = vpop.eup %1200  ;;  %1025 = vmatprep.subr.bf16.mxu0 %v1024_v44  ;;  %v1026_v56 = vpack.c.bf16 %v673_v45, %v671_v38  ;;  %v678_v58 = vmul.f32 %v1199_v47, %v406_v60  ;;  %1220 = vpow2.f32 %v1001_v30  ;;  %v1888_v30 = vld [vmem:[%s1797_s2 + $0x40] sm:$0xff]  ;;  %v445_v38 = vld [vmem:[%s1804_s16 + $0x70] sm:$0xff]  ;;  %v446_v45 = vld [vmem:[%s1804_s16 + $0x78] sm:$0xff]  ;;  %s1386_s16 = sshll.u32 %s1504_s29, 4  ;;  %s1387_s16 = int_to_ptr.vmem [resolvable:$false] %s1386_s16 }
  0xb1   : > { %v1203_v52 = vpop.eup %1202  ;;  %1222 = vpow2.f32 %v1003_v34  ;;  %v675_v2 = vmul.f32 %v1201_v54, %v403_v61  ;;  %v392_v47 = vld [vmem:[%s1797_s2 + $0x48] sm:$0xff]  ;;  %s1388_s18 = scalar_lea.vmem %s1387_s16, 128  ;;  %p1389_p13 = scmp.lt.s32.totalorder %s1922_s0, %s1387_s16 }
  0xb2   : > { %v1205_v0 = vpop.eup %1204  ;;  %1027 = vmatpush1.bf16.xpose.msra.mxu0 %v1026_v56  ;;  %v1028_v55 = vpack.c.bf16 %v678_v58, %v676_v50  ;;  %v677_v3 = vmul.f32 %v1203_v52, %v405_v1  ;;  %1224 = vpow2.f32 %v1000_v35  ;;  %v409_v1 = vunpack.c.l.bf16 %v1848_v6  ;;  %p1390_p7 = scmp.lt.s32.totalorder %s1388_s18, %s1382_s11 }
  0xb3   : > { %v1207_v60 = vpop.eup %1206  ;;  %v680_v4 = vmul.f32 %v1205_v0, %v408_v7  ;;  %1226 = vpow2.f32 %v1002_v46  ;;  %v414_v35 = vunpack.c.h.bf16 %v1884_v24  ;;  %v416_v50 = vunpack.c.h.bf16 %v1888_v30 }
  0xb4   : > { %v1209_v8 = vpop.eup %1208  ;;  %1029 = vmatprep.subr.bf16.mxu0 %v1028_v55  ;;  %v682_v9 = vmul.f32 %v1207_v60, %v410_v20  ;;  %1228 = vpow2.f32 %v1005_v51  ;;  %v1030_v61 = vpack.c.bf16 %v677_v3, %v675_v2  ;;  %v473_v51 = vunpack.c.l.bf16 %v1860_v48  ;;  %p1391_p9 = por %p1390_p7, %p1389_p13 }
  0xb5   : > { %v1211_v12 = vpop.eup %1210  ;;  %1230 = vpow2.f32 %v1007_v59  ;;  %v679_v6 = vmul.f32 %v1209_v8, %v407_v43  ;;  %v1008_v56 = vmul.f32 -1.442695, %v471_v32  ;;  %v476_v58 = vunpack.c.h.bf16 %v445_v38  ;;  %v395_v32 = vld [vmem:[%s1797_s2 + $0x60] sm:$0xff] }
  0xb6   : > { %v1213_v49 = vpop.eup %1212  ;;  %1232 = vpow2.f32 %v1004_v62  ;;  %v1032_v14 = vpack.c.bf16 %v682_v9, %v680_v4  ;;  %v681_v20 = vmul.f32 %v1211_v12, %v409_v1  ;;  %v478_v62 = vunpack.c.h.bf16 %v446_v45  ;;  %v393_v9 = vld [vmem:[%s1797_s2 + $0x50] sm:$0xff]  ;;  %v394_v1 = vld [vmem:[%s1797_s2 + $0x58] sm:$0xff]  ;;  %p1392_p12 = pnand %p1391_p9, %p1385_p2 }
  0xb7   : > { %v1215_v7 = vpop.eup %1214  ;;  %v590_v15 = vadd.f32 1.0, %v1213_v49  ;;  %1234 = vpow2.f32 %v1006_v5  ;;  %v418_v0 = vunpack.c.h.bf16 %v392_v47  ;;  %v475_v2 = vunpack.c.l.bf16 %v445_v38 }
  0xb8   : > { %v1217_v17 = vpop.eup %1216  ;;  %1236 = vpow2.f32 %v1009_v10  ;;  %v1034_v34 = vpack.c.bf16 %v681_v20, %v679_v6  ;;  %v684_v52 = vmul.f32 %v1215_v7, %v412_v29  ;;  %v1010_v60 = vmul.f32 -1.442695, %v473_v51 }
  0xb9   : > { %v1219_v18 = vpop.eup %1218  ;;  %1238 = vrcp.f32 %v590_v15  ;;  %v587_v57 = vadd.f32 1.0, %v1217_v17  ;;  %v477_v4 = vunpack.c.l.bf16 %v446_v45  ;;  %v415_v8 = vunpack.c.l.bf16 %v1888_v30 }
  0xba   : > { %v1221_v19 = vpop.eup %1220  ;;  %1031 = vmatpush1.bf16.xpose.msra.mxu0 %v1030_v61  ;;  %v589_v22 = vadd.f32 1.0, %v1219_v18  ;;  %1240 = vpow2.f32 %v1011_v13  ;;  %v1013_v12 = vmul.f32 -1.442695, %v476_v58  ;;  %v1015_v13 = vmul.f32 -1.442695, %v478_v62 }
  0xbb   : > { %v1223_v23 = vpop.eup %1222  ;;  %1033 = vmatprep.subr.bf16.mxu0 %v1032_v14  ;;  %1242 = vrcp.f32 %v587_v57  ;;  %v592_v25 = vadd.f32 1.0, %v1221_v19  ;;  %v417_v15 = vunpack.c.l.bf16 %v392_v47  ;;  %v1012_v16 = vmul.f32 -1.442695, %v475_v2 }
  0xbc   : > { %v1225_v26 = vpop.eup %1224  ;;  %1244 = vrcp.f32 %v589_v22  ;;  %v594_v27 = vadd.f32 1.0, %v1223_v23  ;;  %v420_v57 = vunpack.c.h.bf16 %v393_v9  ;;  %v1014_v19 = vmul.f32 -1.442695, %v477_v4  ;;  %v398_v4 = vld [vmem:[%s1797_s2 + $0x78] sm:$0xff] }
  0xbd   : > { %v1227_v28 = vpop.eup %1226  ;;  %1246 = vrcp.f32 %v592_v25  ;;  %v591_v31 = vadd.f32 1.0, %v1225_v26  ;;  %v422_v22 = vunpack.c.h.bf16 %v394_v1  ;;  %v419_v38 = vunpack.c.l.bf16 %v393_v9 }
  0xbe   : > { %v1229_v33 = vpop.eup %1228  ;;  %1248 = vrcp.f32 %v594_v27  ;;  %v593_v36 = vadd.f32 1.0, %v1227_v28 }
  0xbf   : > { %v1231_v39 = vpop.eup %1230  ;;  %1250 = vrcp.f32 %v591_v31  ;;  %v596_v44 = vadd.f32 1.0, %v1229_v33  ;;  %v396_v33 = vld [vmem:[%s1797_s2 + $0x68] sm:$0xff] }
  0xc0   : > { %v1233_v46 = vpop.eup %1232  ;;  %1252 = vrcp.f32 %v593_v36  ;;  %v598_v41 = vadd.f32 1.0, %v1231_v39  ;;  %v421_v39 = vunpack.c.l.bf16 %v394_v1  ;;  %v426_v45 = vunpack.c.h.bf16 %v396_v33 }
  0xc1   : > { %v1235_v53 = vpop.eup %1234  ;;  %1254 = vrcp.f32 %v596_v44  ;;  %v595_v54 = vadd.f32 1.0, %v1233_v46  ;;  %v424_v44 = vunpack.c.h.bf16 %v395_v32 }
  0xc2   : > { %v1237_v37 = vpop.eup %1236  ;;  %1035 = vmatpush1.bf16.xpose.msra.mxu0 %v1034_v34  ;;  %1256 = vrcp.f32 %v598_v41  ;;  %v597_v59 = vadd.f32 1.0, %v1235_v53 }
  0xc3   : > { %v1239_v63 = vpop.eup %1238  ;;  %1258 = vrcp.f32 %v595_v54  ;;  %v600_v55 = vadd.f32 1.0, %v1237_v37 }
  0xc4   : > { %v1241_v3 = vpop.eup %1240  ;;  %v686_v48 = vmul.f32 %v1239_v63, %v414_v35  ;;  %1260 = vrcp.f32 %v597_v59 }
  0xc5   : > { %v1243_v5 = vpop.eup %1242  ;;  %v602_v10 = vadd.f32 1.0, %v1241_v3  ;;  %1262 = vrcp.f32 %v600_v55 }
  0xc6   : > { %v1245_v43 = vpop.eup %1244  ;;  %v1036_v49 = vpack.c.bf16 %v686_v48, %v684_v52  ;;  %v683_v61 = vmul.f32 %v1243_v5, %v411_v40  ;;  %1264 = vpow2.f32 %v1008_v56  ;;  %v423_v48 = vunpack.c.l.bf16 %v395_v32 }
  0xc7   : > { %v1247_v7 = vpop.eup %1246  ;;  %v685_v14 = vmul.f32 %v1245_v43, %v413_v42  ;;  %1266 = vrcp.f32 %v602_v10  ;;  %v425_v5 = vunpack.c.l.bf16 %v396_v33 }
  0xc8   : > { %v1249_v17 = vpop.eup %1248  ;;  %1037 = vmatprep.subr.bf16.mxu0 %v1036_v49  ;;  %v688_v18 = vmul.f32 %v1247_v7, %v416_v50  ;;  %1268 = vpow2.f32 %v1010_v60  ;;  %v397_v60 = vld [vmem:[%s1797_s2 + $0x70] sm:$0xff]  ;;  %s1920_s2 = scalar_lea.hbm %s2036_s14, %s1018_s6 }
  0xc9   : > { %v1251_v6 = vpop.eup %1250  ;;  %v1038_v20 = vpack.c.bf16 %v685_v14, %v683_v61  ;;  %v690_v21 = vmul.f32 %v1249_v17, %v418_v0  ;;  %1270 = vpow2.f32 %v1013_v12  ;;  %v428_v9 = vunpack.c.h.bf16 %v397_v60 }
  0xca   : > { %v1253_v23 = vpop.eup %1252  ;;  %1272 = vpow2.f32 %v1015_v13  ;;  %v687_v26 = vmul.f32 %v1251_v6, %v415_v8  ;;  %v430_v12 = vunpack.c.h.bf16 %v398_v4  ;;  %v427_v1 = vunpack.c.l.bf16 %v397_v60 }
  0xcb   : > { %v1255_v24 = vpop.eup %1254  ;;  %1039 = vmatpush1.bf16.xpose.msra.mxu0 %v1038_v20  ;;  %v1040_v25 = vpack.c.bf16 %v690_v21, %v688_v18  ;;  %v689_v27 = vmul.f32 %v1253_v23, %v417_v15  ;;  %1274 = vpow2.f32 %v1012_v16  ;;  %v429_v13 = vunpack.c.l.bf16 %v398_v4  ;;  %v790_v21 = vld [vmem:[%s376_s22] sm:$0x1] }
  0xcc   : > { %v1257_v28 = vpop.eup %1256  ;;  %v692_v29 = vmul.f32 %v1255_v24, %v420_v57  ;;  %1276 = vpow2.f32 %v1014_v19 }
  0xcd   : > { %v1259_v30 = vpop.eup %1258  ;;  %1041 = vmatprep.subr.bf16.mxu0 %v1040_v25  ;;  %v694_v31 = vmul.f32 %v1257_v28, %v422_v22  ;;  %v1042_v36 = vpack.c.bf16 %v689_v27, %v687_v26  ;;  %v1016_v22 = vmul.f32 -1.442695, %v790_v21  ;;  %v709_v25 = vld [vmem:[#allocation2] sm:$0xf] }
  0xce   : > { %v1261_v34 = vpop.eup %1260  ;;  %v691_v51 = vmul.f32 %v1259_v30, %v419_v38 }
  0xcf   : > { %v1263_v35 = vpop.eup %1262  ;;  %v1044_v42 = vpack.c.bf16 %v694_v31, %v692_v29  ;;  %v693_v53 = vmul.f32 %v1261_v34, %v421_v39  ;;  %v789_v29 = vld [vmem:[%s368_s13] sm:$0x1] }
  0xd0   : > { %v1265_v40 = vpop.eup %1264  ;;  %v696_v58 = vmul.f32 %v1263_v35, %v424_v44 }
  0xd1   : > { %v1267_v46 = vpop.eup %1266  ;;  %v599_v47 = vadd.f32 1.0, %v1265_v40  ;;  %v1046_v55 = vpack.c.bf16 %v693_v53, %v691_v51 }
  0xd2   : > { %v1269_v50 = vpop.eup %1268  ;;  %v698_v37 = vmul.f32 %v1267_v46, %v426_v45 }
  0xd3   : > { %v1271_v41 = vpop.eup %1270  ;;  %1043 = vmatpush1.bf16.xpose.msra.mxu0 %v1042_v36  ;;  %v601_v54 = vadd.f32 1.0, %v1269_v50  ;;  %1278 = vrcp.f32 %v599_v47 }
  0xd4   : > { %v1273_v56 = vpop.eup %1272  ;;  %1045 = vmatprep.subr.bf16.mxu0 %v1044_v42  ;;  %v604_v52 = vadd.f32 1.0, %v1271_v41  ;;  %v1048_v3 = vpack.c.bf16 %v698_v37, %v696_v58 }
  0xd5   : > { %v1275_v59 = vpop.eup %1274  ;;  %1280 = vrcp.f32 %v601_v54  ;;  %v606_v62 = vadd.f32 1.0, %v1273_v56 }
  0xd6   : > { %v1277_v63 = vpop.eup %1276  ;;  %1282 = vrcp.f32 %v604_v52  ;;  %v603_v0 = vadd.f32 1.0, %v1275_v59 }
  0xd7   : > { %1284 = vrcp.f32 %v606_v62  ;;  %v605_v2 = vadd.f32 1.0, %v1277_v63 }
  0xd8   : > { %1286 = vrcp.f32 %v603_v0 }
  0xd9   : > { %1288 = vrcp.f32 %v605_v2 }
  0xda   : > { %1290 = vpow2.f32 %v1016_v22 }
  0xdb   : > { %1047 = vmatpush1.bf16.xpose.msra.mxu0 %v1046_v55 }
  0xdc   : > { %1049 = vmatprep.subr.bf16.mxu0 %v1048_v3 }
  0xdd   : > { %v1279_v8 = vpop.eup %1278 }
  0xde   : > { %v695_v10 = vmul.f32 %v1279_v8, %v423_v48 }
  0xdf   : > { %v1281_v43 = vpop.eup %1280 }
  0xe0   : > { %v1283_v49 = vpop.eup %1282  ;;  %v697_v61 = vmul.f32 %v1281_v43, %v425_v5 }
  0xe1   : > { %v1285_v7 = vpop.eup %1284  ;;  %v700_v14 = vmul.f32 %v1283_v49, %v428_v9 }
  0xe2   : > { %v1287_v15 = vpop.eup %1286  ;;  %v1050_v16 = vpack.c.bf16 %v697_v61, %v695_v10  ;;  %v702_v17 = vmul.f32 %v1285_v7, %v430_v12 }
  0xe3   : > { %v1289_v18 = vpop.eup %1288  ;;  %v699_v19 = vmul.f32 %v1287_v15, %v427_v1 }
  0xe4   : > { %1051 = vmatpush1.bf16.xpose.msra.mxu0 %v1050_v16  ;;  %v1052_v57 = vpack.c.bf16 %v702_v17, %v700_v14  ;;  %v701_v6 = vmul.f32 %v1289_v18, %v429_v13  ;;  %v1291_v23 = vpop.eup %1290 }
  0xe5   : > { %v794_v24 = vadd.f32 1.0, %v1291_v23 }
  0xe6   : > { %1053 = vmatprep.subr.bf16.mxu0 %v1052_v57  ;;  %v1054_v20 = vpack.c.bf16 %v701_v6, %v699_v19 }
  0xe7   : > { %1292 = vrcp.f32 %v794_v24 }
  0xec   : > { %1055 = vmatpush1.bf16.xpose.msra.mxu0 %v1054_v20 }
  0xf1   : > { %v1293_v27 = vpop.eup %1292 }
  0xf2   : > { %v797_v32 = vmul.f32 %v1293_v27, %v789_v29 }
  0xf3   : > { %778 = vmatmul.mubr.f32.vlgmr.msra.gmra.mrb[0].mxu0 %v1874_v11  ;;  %v799_v11 = vlaneseq }
  0xf5   : > { %v800_v26 = vshrl.u32 %v799_v11, 7 }
  0xf7   : > { %v801_v33 = vsub.s32 0, %v800_v26 }
  0xf9   : > { %v802_v34 = vrot.slane %v797_v32, %v801_v33 }
 0x1c6   : > { %v779_v28 = vpop.f32.mrb[0].mxu0 }
 0x1c7   : > { %v783_v30 = vadd.f32 %v779_v28, %v709_v25  ;;  %v781_v31 = vpop.f32.mrb[1].mxu0 }
 0x1c9   : > { %784 = vst [vmem:[#allocation2] sm:$0xf] %v783_v30 }
 0x1d0   : > { %v788_v35 = vld [vmem:[#allocation2] sm:$0xf] }
 0x1d1   : > { %v804_v36 = vadd.f32 %v802_v34, %v788_v35 }
 0x1d3   : > { %805 = vst [vmem:[%s360_s26] sm:$0xf] %v804_v36 }
 0x1d4   : > { %1395 = shalt.err (!%p1392_p12)
}
 0x1d5   : > { %s1396_s30 = scalar_lea.hbm %s1920_s2, 64  ;;  %s1400_s15 = scalar_lea.hbm %s2036_s14, 128 }
 0x1d6   : > { %p1397_p11 = scmp.ne.s32.totalorder %s1920_s2, %s1396_s30  ;;  %p1401_p3 = scmp.lt.u32.totalorder %s1920_s2, %s2036_s14 }
 0x1d7   : > { %p1402_p8 = scmp.lt.u32.totalorder %s1400_s15, %s1396_s30  ;;  %p1404_p0 = scmp.lt.u32.totalorder %s1396_s30, %s1920_s2 }
 0x1d8   : > { %p1398_p4 = pnand %p1397_p11, %p2037_p5 }
 0x1d9   : > { %p1403_p6 = por %p1402_p8, %p1401_p3 }
 0x1da   : > { %p1399_p10 = pneg %p1398_p4 }
 0x1db   : > { %p1405_p1 = por %p1404_p0, %p1403_p6 }
 0x1dd   : > { %p1406_p2 = pnand %p1405_p1, %p1399_p10 }
 0x1df   : > { %1409 = shalt.err (!%p1406_p2)
}
 0x1e0   : > { %1064 = dma.vmem_to_hbm [thread:$0]  (%p2037_p5), %s1922_s0, 64, %s1920_s2, %s807_s28  }
 0x1e1 PF: > { %s2038_s22 = sld [smem:[#allocation16_spill]]  ;;  %s2039_s19 = sld [smem:[#allocation23_spill]] }
 0x1e2   : > { %s2040_s17 = sld [smem:[#allocation19_spill]] }
 0x1e7   : > { %s832_s13 = sand.u32 1, %s2038_s22   ;;  %p2041_p13 = scmp.ne.s32.totalorder %s2039_s19, 0 }
 0x1e8   : > { %p2042_p7 = scmp.ge.s32.totalorder %s2040_s17, 2  ;;  %s833_s9 = scalar_lea.sflag [#allocation7], %s832_s13 }
 0x1ea   : > { %p1078_p9 = pnand %p2042_p7, %p2041_p13 }
 0x1ec   : > { %1459 = dma.done.wait (!%p1078_p9), %s833_s9, 64  }
 0x1ed   : > { %1461 = vsyncadd (!%p1078_p9), %s833_s9, 4294967232  ;;  %s24_s30 = sadd.s32 1, %s2040_s17   ;;  %s2043_s20 = sld [smem:[#allocation22_spill]] }
 0x1ee   : > { %p21_p12 = scmp.ge.s32.totalorder %s24_s30, 4   ;;  %s2044_s6 = sld [smem:[#allocation17_spill]] }
 0x1ef   : > { %s2045_s28 = sld [smem:[#allocation21_spill]]  ;;  %s2046_s29 = sld [smem:[#allocation18_spill]] }
 0x1f0   : > { %s2047_s0 = sld [smem:[#allocation20_spill]]  ;;  %s2048_s23 = smov %s1468_s24 }
 0x1f1   : > { %s2049_s24 = smov %s1472_s25  ;;  %s2051_s26 = smov %s1480_s27 }
 0x1f2   :  { %23 = sbr.rel (!%p21_p12) target bundleno = 13 (0xd), region = 116 }
 0x1f3   : > { %s2050_s25 = smov %s2043_s20 }
 0x1f4   : > { %s2052_s27 = smov %s2044_s6 }
 0x1f9   :  { %838 = vsyncpa [#allocation6], 1 }
 0x1fa   :  { %840 = vsyncpa [#allocation6 + $0x1], 1 }
 0x1fb   :  { %841 = vsyncpa [#allocation9], 1 }
 0x1fc   :  { %843 = vsyncpa [#allocation9 + $0x1], 1 }
 0x1fd   :  { %844 = vsyncpa [#allocation7], 1 }
 0x1fe   :  { %846 = vsyncpa [#allocation7 + $0x1], 1 }

</bundles_post_ra>
